<compile_context>
chip_gen: v6e
topology: v6e:2x2x1
jax: 0.10.0
libtpu: 0.0.40
codegen_flags: <defaults>
</compile_context>

<pallas_src>
import math

import jax
import jax.numpy as jnp
from jax import lax
from jax.experimental import pallas as pl
from jax.experimental.pallas import tpu as pltpu

EPS = 1e-6

# Per-generation tuning:
#   (target bytes per block buffer, usable VMEM budget, multi-TC "parallel" axis)
_GEN_CONFIG = {
    "v7x":     (4 << 20, 56 << 20, True),    # 64 MiB physical VMEM, 2 TC/chip
    "v6e":     (4 << 20, 100 << 20, False),  # 128 MiB VMEM, 1 TC
    "v5e":     (2 << 20, 100 << 20, False),  # 128 MiB VMEM, 1 TC
    "v5p":     (2 << 20, 100 << 20, True),
    "v4":      (2 << 20, 100 << 20, True),
    "unknown": (2 << 20, 32 << 20, True),
}


def _tpu_generation():
    try:
        kind = jax.devices()[0].device_kind.lower()
    except Exception:
        return "unknown"
    if "v7" in kind or "tpu7" in kind or "7x" in kind:
        return "v7x"
    if "v6" in kind:
        return "v6e"
    if "v5p" in kind:
        return "v5p"
    if "v5" in kind:
        return "v5e"
    if "v4" in kind:
        return "v4"
    return "unknown"


def _vmem_footprint(tile_rows, d, itemsize):
    """Rough VMEM need: double-buffered in/out blocks + f32 temporaries."""
    blk = tile_rows * d * itemsize
    f32 = tile_rows * d * 4
    return 4 * blk + 4 * f32 + (1 << 20)


def _choose_tile_rows(rows, d, itemsize, gen):
    """Byte-capped row tile: big enough to be HBM-bound, small enough for VMEM."""
    target_bytes, vmem_cap, multi_tc = _GEN_CONFIG[gen]
    sub = {4: 8, 2: 16, 1: 32}.get(itemsize, 8)   # sublane packing per dtype
    row_bytes = max(1, d * itemsize)
    # No fixed row-count cap: clamp by bytes so small-D shapes still get big blocks.
    tile_rows = max(sub, (target_bytes // row_bytes) // sub * sub)
    rows_up = ((rows + sub - 1) // sub) * sub
    tile_rows = min(tile_rows, rows_up)
    if multi_tc:
        # Two TensorCores share the "parallel" grid axis: keep >= 2 steps when
        # there is enough work.  Single-TC v5e/v6e never shrink (the grid is a
        # serial loop there; extra steps are pure per-step overhead).
        while tile_rows > sub and pl.cdiv(rows, tile_rows) < 2:
            tile_rows = max(sub, ((tile_rows // 2) // sub) * sub)
    # VMEM guard (matters on v7x: 64 MiB physical / 32 MiB scoped default).
    while tile_rows > sub and _vmem_footprint(tile_rows, d, itemsize) > vmem_cap:
        tile_rows = max(sub, ((tile_rows // 2) // sub) * sub)
    if _vmem_footprint(tile_rows, d, itemsize) > vmem_cap:
        # TODO(synk): feature-axis tiling (two-pass sum/sum-sq scratch) for rows
        # whose minimum 8xD tile exceeds VMEM; not needed for transformer sizes.
        raise ValueError(
            f"LayerNorm feature width {d} does not fit VMEM on TPU '{gen}'.")
    return tile_rows


def _vmem_limit_bytes(tile_rows, d, itemsize, gen):
    _, vmem_cap, _ = _GEN_CONFIG[gen]
    return int(min(vmem_cap, max(_vmem_footprint(tile_rows, d, itemsize), 32 << 20)))


def _make_layernorm_kernel(d, g):
    """LayerNorm over rows of width d; g logical rows packed per VMEM row."""
    gd = g * d
    inv_d = 1.0 / d
    inv_dm1 = 1.0 / (d - 1)   # PyTorch tensor.std() is unbiased (ddof=1)

    def kernel(alpha_ref, bias_ref, x_ref, o_ref):
        x = x_ref[...].astype(jnp.float32)            # (tile_rows, gd)
        alpha = alpha_ref[0]
        bias = bias_ref[0]

        if g == 1:
            mean = jnp.mean(x, axis=-1, keepdims=True)
            diff = x - mean                            # only feeds the reduction
            var = jnp.sum(diff * diff, axis=-1, keepdims=True) * jnp.float32(inv_dm1)
            scale = alpha / (jnp.sqrt(var) + jnp.float32(EPS))     # (rows, 1)
            shift = bias - mean * scale                            # (rows, 1)
            # Store pass re-reads x; no full-tile diff kept live across it.
            o_ref[...] = (x * scale + shift).astype(o_ref.dtype)
        else:
            # Lane-dense path for d < 128: each VMEM row packs g logical rows
            # across the 128 lanes (full-lane, unmasked loads/stores).
            # Segmented stats and their broadcast-back use tiny one-hot matmuls
            # on the MXU (plenty of slack in this HBM-bound kernel); HIGHEST
            # precision keeps f32 exactness through the MXU.
            lane = lax.broadcasted_iota(jnp.int32, (gd, g), 0)
            col = lax.broadcasted_iota(jnp.int32, (gd, g), 1)
            seg = ((lane >= col * d) & (lane < (col + 1) * d)).astype(jnp.float32)
            lane_t = lax.broadcasted_iota(jnp.int32, (g, gd), 1)
            row_t = lax.broadcasted_iota(jnp.int32, (g, gd), 0)
            seg_t = ((lane_t >= row_t * d) & (lane_t < (row_t + 1) * d)).astype(jnp.float32)

            hp = jax.lax.Precision.HIGHEST
            mean_seg = jnp.dot(x, seg, precision=hp,
                               preferred_element_type=jnp.float32) * jnp.float32(inv_d)
            mean = jnp.dot(mean_seg, seg_t, precision=hp,
                           preferred_element_type=jnp.float32)      # (rows, gd)
            diff = x - mean
            var_seg = jnp.dot(diff * diff, seg, precision=hp,
                              preferred_element_type=jnp.float32) * jnp.float32(inv_dm1)
            scale_seg = alpha / (jnp.sqrt(var_seg) + jnp.float32(EPS))   # (rows, g)
            scale = jnp.dot(scale_seg, seg_t, precision=hp,
                            preferred_element_type=jnp.float32)     # (rows, gd)
            shift = bias - mean * scale
            o_ref[...] = (x * scale + shift).astype(o_ref.dtype)

    return kernel


def pallas_layernorm(x, alpha, bias, *, tile_rows=None, donate_input=False):
    """Scalar-affine LayerNorm over the last axis (matches LayerNormalization)."""
    orig_shape = x.shape
    d = int(orig_shape[-1])
    if d < 2:
        raise ValueError("unbiased std needs at least 2 features (matches torch .std()).")
    rows = int(math.prod(orig_shape[:-1])) if len(orig_shape) > 1 else 1

    itemsize = jnp.dtype(x.dtype).itemsize
    gen = _tpu_generation()

    # Lane-dense packing for small D: pack g = 128//d rows per 128-lane group so
    # the kernel's last dim is a multiple of 128 (unmasked full-lane stores).
    g = 1
    if d < 128 and 128 % d == 0:
        cand = 128 // d
        if rows % cand == 0:
            g = cand
    rows_p, d_p = rows // g, d * g

    x2 = x.reshape(rows_p, d_p)

    if tile_rows is None:
        tile_rows = _choose_tile_rows(rows_p, d_p, itemsize, gen)
    vmem_limit = _vmem_limit_bytes(tile_rows, d_p, itemsize, gen)

    grid = (pl.cdiv(rows_p, tile_rows),)

    # Advisory cost hint for XLA scheduling around this mem-bound call.
    cost = pl.CostEstimate(
        flops=8 * rows * d,
        transcendentals=rows,
        bytes_accessed=2 * rows * d * itemsize,
    )

    extra = {}
    if donate_input:
        # x (call arg index 2) and the output have identical shape/dtype;
        # aliasing removes one rows*d HBM allocation when x is no longer needed.
        extra["input_output_aliases"] = {2: 0}

    out = pl.pallas_call(
        _make_layernorm_kernel(d, g),
        out_shape=jax.ShapeDtypeStruct((rows_p, d_p), x.dtype),
        grid=grid,
        in_specs=[
            pl.BlockSpec(memory_space=pltpu.MemorySpace.SMEM),  # alpha (1,)
            pl.BlockSpec(memory_space=pltpu.MemorySpace.SMEM),  # bias  (1,)
            pl.BlockSpec((tile_rows, d_p), lambda i: (i, 0)),
        ],
        out_specs=pl.BlockSpec((tile_rows, d_p), lambda i: (i, 0)),
        compiler_params=pltpu.CompilerParams(
            dimension_semantics=("parallel",),
            vmem_limit_bytes=vmem_limit,
        ),
        cost_estimate=cost,
        **extra,
    )(alpha, bias, x2)

    return out.reshape(orig_shape)


def decoder_forward(x, encoder_output, src_mask, tgt_mask, params, layers=()):
    """Mirrors Decoder.forward: apply each injected layer, then the Pallas LayerNorm."""
    # TODO(synk): the decoder layers come from an externally supplied
    # nn.ModuleList (not defined in this module); they are treated as plain JAX
    # callables applied before the Pallas LayerNorm.
    for layer in layers:
        x = layer(x, encoder_output, src_mask, tgt_mask)
    return pallas_layernorm(x, params["alpha"], params["bias"])


def _layernorm_ref(x, alpha, bias):
    xf = x.astype(jnp.float32)
    mean = jnp.mean(xf, axis=-1, keepdims=True)
    std = jnp.std(xf, axis=-1, keepdims=True, ddof=1)
    return (alpha[0] * (xf - mean) / (std + EPS) + bias[0]).astype(x.dtype)


if __name__ == "__main__":
    key = jax.random.PRNGKey(0)
    kx, ke, k2 = jax.random.split(key, 3)

    # Parameters match nn.Parameter(torch.ones(1)) / torch.zeros(1).
    params = {
        "alpha": jnp.ones((1,), dtype=jnp.float32),
        "bias": jnp.zeros((1,), dtype=jnp.float32),
    }

    # Shapes implied by the Decoder forward: (batch, seq, hidden).
    B, S, D = 2, 8, 32
    x = jax.random.normal(kx, (B, S, D), dtype=jnp.float32)
    encoder_output = jax.random.normal(ke, (B, S, D), dtype=jnp.float32)

    out = decoder_forward(x, encoder_output, None, None, params)
    out = jax.block_until_ready(out)
    ref = _layernorm_ref(x, params["alpha"], params["bias"])
    assert out.shape == x.shape
    assert jnp.allclose(out, ref, atol=1e-5, rtol=1e-5)

    # Also exercise the unpacked (D >= 128) path.
    x2 = jax.random.normal(k2, (2, 8, 256), dtype=jnp.float32)
    out2 = jax.block_until_ready(
        pallas_layernorm(x2, params["alpha"], params["bias"]))
    ref2 = _layernorm_ref(x2, params["alpha"], params["bias"])
    assert jnp.allclose(out2, ref2, atol=1e-5, rtol=1e-5)

    print("KERNEL_OK")
</pallas_src>

<mosaic_0001>
module attributes {stable_mosaic.version = 11 : i64} {
  func.func @kernel(%arg0: i32, %arg1: memref<1xf32, #tpu.memory_space<smem>>, %arg2: memref<1xf32, #tpu.memory_space<smem>>, %arg3: memref<8x128xf32, #tpu.memory_space<vmem>>, %arg4: memref<8x128xf32, #tpu.memory_space<vmem>>) attributes {dimension_semantics = [#tpu.dimension_semantics<parallel>], iteration_bounds = array<i64: 1>, scalar_prefetch = 0 : i64, scratch_operands = 0 : i64, tpu.core_type = #tpu.core_type<tc>, window_params = [{transform_indices = @transform_0, window_bounds = array<i64: 1>}, {transform_indices = @transform_1, window_bounds = array<i64: 1>}, {transform_indices = @transform_2, window_bounds = array<i64: 8, 128>}, {transform_indices = @transform_3, window_bounds = array<i64: 8, 128>}]} {
    %c0 = arith.constant 0 : index
    %c0_0 = arith.constant 0 : index
    %0 = vector.load %arg3[%c0, %c0_0] : memref<8x128xf32, #tpu.memory_space<vmem>>, vector<8x128xf32>
    %c0_1 = arith.constant 0 : index
    %1 = memref.load %arg1[%c0_1] : memref<1xf32, #tpu.memory_space<smem>>
    %c0_2 = arith.constant 0 : index
    %2 = memref.load %arg2[%c0_2] : memref<1xf32, #tpu.memory_space<smem>>
    %3 = tpu.iota {dimensions = array<i32: 0>} : vector<128x4xi32>
    %4 = tpu.iota {dimensions = array<i32: 1>} : vector<128x4xi32>
    %c32_i32 = arith.constant 32 : i32
    %5 = vector.broadcast %c32_i32 : i32 to vector<128x4xi32>
    %6 = arith.muli %4, %5 : vector<128x4xi32>
    %7 = arith.cmpi sge, %3, %6 : vector<128x4xi32>
    %c1_i32 = arith.constant 1 : i32
    %8 = vector.broadcast %c1_i32 : i32 to vector<128x4xi32>
    %9 = arith.addi %4, %8 : vector<128x4xi32>
    %c32_i32_3 = arith.constant 32 : i32
    %10 = vector.broadcast %c32_i32_3 : i32 to vector<128x4xi32>
    %11 = arith.muli %9, %10 : vector<128x4xi32>
    %12 = arith.cmpi slt, %3, %11 : vector<128x4xi32>
    %13 = arith.andi %7, %12 : vector<128x4xi1>
    %14 = arith.extui %13 : vector<128x4xi1> to vector<128x4xi32>
    %15 = arith.sitofp %14 : vector<128x4xi32> to vector<128x4xf32>
    %16 = tpu.iota {dimensions = array<i32: 1>} : vector<4x128xi32>
    %17 = tpu.iota {dimensions = array<i32: 0>} : vector<4x128xi32>
    %c32_i32_4 = arith.constant 32 : i32
    %18 = vector.broadcast %c32_i32_4 : i32 to vector<4x128xi32>
    %19 = arith.muli %17, %18 : vector<4x128xi32>
    %20 = arith.cmpi sge, %16, %19 : vector<4x128xi32>
    %c1_i32_5 = arith.constant 1 : i32
    %21 = vector.broadcast %c1_i32_5 : i32 to vector<4x128xi32>
    %22 = arith.addi %17, %21 : vector<4x128xi32>
    %c32_i32_6 = arith.constant 32 : i32
    %23 = vector.broadcast %c32_i32_6 : i32 to vector<4x128xi32>
    %24 = arith.muli %22, %23 : vector<4x128xi32>
    %25 = arith.cmpi slt, %16, %24 : vector<4x128xi32>
    %26 = arith.andi %20, %25 : vector<4x128xi1>
    %27 = arith.extui %26 : vector<4x128xi1> to vector<4x128xi32>
    %28 = arith.sitofp %27 : vector<4x128xi32> to vector<4x128xf32>
    %cst = arith.constant dense<0.000000e+00> : vector<8x4xf32>
    %29 = tpu.matmul %0, %15, %cst {dimension_numbers = #tpu.dot_dimension_numbers<[1], [0], [0], [1], [0, 0, 1, 1], [], []>, precision = #tpu.contract_precision<fp32>} : vector<8x128xf32>, vector<128x4xf32>, vector<8x4xf32> -> vector<8x4xf32>
    %cst_7 = arith.constant 3.125000e-02 : f32
    %30 = vector.broadcast %cst_7 : f32 to vector<8x4xf32>
    %31 = arith.mulf %29, %30 : vector<8x4xf32>
    %cst_8 = arith.constant dense<0.000000e+00> : vector<8x128xf32>
    %32 = tpu.matmul %31, %28, %cst_8 {dimension_numbers = #tpu.dot_dimension_numbers<[1], [0], [0], [1], [0, 0, 1, 1], [], []>, precision = #tpu.contract_precision<fp32>} : vector<8x4xf32>, vector<4x128xf32>, vector<8x128xf32> -> vector<8x128xf32>
    %33 = arith.subf %0, %32 : vector<8x128xf32>
    %34 = arith.mulf %33, %33 : vector<8x128xf32>
    %cst_9 = arith.constant dense<0.000000e+00> : vector<8x4xf32>
    %35 = tpu.matmul %34, %15, %cst_9 {dimension_numbers = #tpu.dot_dimension_numbers<[1], [0], [0], [1], [0, 0, 1, 1], [], []>, precision = #tpu.contract_precision<fp32>} : vector<8x128xf32>, vector<128x4xf32>, vector<8x4xf32> -> vector<8x4xf32>
    %cst_10 = arith.constant 0.0322580636 : f32
    %36 = vector.broadcast %cst_10 : f32 to vector<8x4xf32>
    %37 = arith.mulf %35, %36 : vector<8x4xf32>
    %38 = math.sqrt %37 : vector<8x4xf32>
    %cst_11 = arith.constant 9.99999997E-7 : f32
    %39 = vector.broadcast %cst_11 : f32 to vector<8x4xf32>
    %40 = arith.addf %38, %39 : vector<8x4xf32>
    %41 = vector.broadcast %1 : f32 to vector<8x4xf32>
    %42 = arith.divf %41, %40 : vector<8x4xf32>
    %cst_12 = arith.constant dense<0.000000e+00> : vector<8x128xf32>
    %43 = tpu.matmul %42, %28, %cst_12 {dimension_numbers = #tpu.dot_dimension_numbers<[1], [0], [0], [1], [0, 0, 1, 1], [], []>, precision = #tpu.contract_precision<fp32>} : vector<8x4xf32>, vector<4x128xf32>, vector<8x128xf32> -> vector<8x128xf32>
    %44 = arith.mulf %32, %43 : vector<8x128xf32>
    %45 = vector.broadcast %2 : f32 to vector<8x128xf32>
    %46 = arith.subf %45, %44 : vector<8x128xf32>
    %47 = arith.mulf %0, %43 : vector<8x128xf32>
    %48 = arith.addf %47, %46 : vector<8x128xf32>
    %c0_13 = arith.constant 0 : index
    %c0_14 = arith.constant 0 : index
    %49 = vector.load %arg4[%c0_13, %c0_14] : memref<8x128xf32, #tpu.memory_space<vmem>>, vector<8x128xf32>
    tpu.vector_store %arg4[%c0_13, %c0_14], %48 {strides = array<i32>} : memref<8x128xf32, #tpu.memory_space<vmem>>, vector<8x128xf32>,
    return
  }
  func.func @transform_0(%arg0: i32) -> i32 {
    %c0_i32 = arith.constant 0 : i32
    %c0_i32_0 = arith.constant 0 : i32
    return %c0_i32 : i32
  }
  func.func @transform_1(%arg0: i32) -> i32 {
    %c0_i32 = arith.constant 0 : i32
    %c0_i32_0 = arith.constant 0 : i32
    return %c0_i32 : i32
  }
  func.func @transform_2(%arg0: i32) -> (i32, i32) {
    %c0_i32 = arith.constant 0 : i32
    %c0_i32_0 = arith.constant 0 : i32
    return %arg0, %c0_i32 : i32, i32
  }
  func.func @transform_3(%arg0: i32) -> (i32, i32) {
    %c0_i32 = arith.constant 0 : i32
    %c0_i32_0 = arith.constant 0 : i32
    return %arg0, %c0_i32 : i32, i32
  }
}

</mosaic_0001>

<bundles_post_ra>
// kernel: tpu_custom_call.1
= control target key start
LH: loop header
LB: loop body
LE: loop exit
PB: predicated region body
PF: predicated region fallthrough
CT: control target
= control target key end

     0   :  { %10 = vsyncpa [#allocation5], 0  ;;  %v20_v0 = vlaneseq  ;;  %v4396_v2 = vmov 0.0   ;;  %vm4349_vm0 = vmmov 0   ;;  %v4359_v18 = vmov 1.0   ;;  %s4345_s0 = inlined_call_operand.<no memory space> [shape: f32[1], index: 0, kind: input, shape index: {}]   ;;  %s4346_s1 = inlined_call_operand.<no memory space> [shape: f32[1], index: 1, kind: input, shape index: {}]   ;;  %s4347_s2 = inlined_call_operand.vmem [shape: f32[4,128], index: 2, kind: input, shape index: {}]   ;;  %s4348_s3 = inlined_call_operand.hbm [shape: f32[4,128], index: 3, kind: output, shape index: {}]  }
   0x1   :  { %v3241_v1 = vld [vmem:[%s4347_s2] sm:$0xff]  ;;  %2699 = vmatprep.subr.mxu0 %v4396_v2  ;;  %2734 = vmatprep.subr.mxu1 %v4396_v2  ;;  %v4413_v36 = vmov 0  ;;  %v4417_v44 = vmov 0  ;;  %v4421_v52 = vmov 0  ;;  %v4424_v55 = vmov 0 }
   0x2   :  { %4402 = vst [vmem:[#allocation7_spill] sm:$0xff] %v3241_v1  ;;  %v3246_v3 = vand.u32 4294901760, %v3241_v1  ;;  %v3248_v4 = vshrl.u32 %v20_v0, 7  ;;  %v3250_v5 = vand.u32 127, %v20_v0  ;;  %2731 = vmatprep.mubr.msk.f32.mxu0 %vm4349_vm0, %v4396_v2  ;;  %2766 = vmatprep.mubr.msk.f32.mxu1 %vm4349_vm0, %v4396_v2  ;;  %v4429_v62 = vmov 0 }
   0x4   :  { %v3258_v6 = vsub.f32 %v3241_v1, %v3246_v3  ;;  %v36_v7 = vadd.s32 120, %v3248_v4  ;;  %v3262_v8 = vmul.u32 32, %v3250_v5  ;;  %v56_v9 = vadd.s32 1, %v3250_v5 }
   0x5   :  { %v35_v10 = vadd.s32 112, %v3248_v4  ;;  %v34_v11 = vadd.s32 104, %v3248_v4  ;;  %v33_v12 = vadd.s32 96, %v3248_v4  ;;  %v32_v13 = vadd.s32 88, %v3248_v4 }
   0x6   :  { %v31_v14 = vadd.s32 80, %v3248_v4  ;;  %vm55_vm1 = vcmp.ge.s32.totalorder %v36_v7, %v3262_v8  ;;  %v3271_v15 = vmul.u32 32, %v56_v9  ;;  %v30_v16 = vadd.s32 72, %v3248_v4 }
   0x7   :  { %vm54_vm2 = vcmp.ge.s32.totalorder %v35_v10, %v3262_v8  ;;  %vm53_vm3 = vcmp.ge.s32.totalorder %v34_v11, %v3262_v8  ;;  %vm52_vm4 = vcmp.ge.s32.totalorder %v33_v12, %v3262_v8  ;;  %vm51_vm5 = vcmp.ge.s32.totalorder %v32_v13, %v3262_v8 }
   0x8   :  { %vm50_vm6 = vcmp.ge.s32.totalorder %v31_v14, %v3262_v8  ;;  %vm73_vm7 = vcmp.lt.s32.totalorder %v36_v7, %v3271_v15  ;;  %vm72_vm8 = vcmp.lt.s32.totalorder %v35_v10, %v3271_v15  ;;  %vm71_vm9 = vcmp.lt.s32.totalorder %v34_v11, %v3271_v15 }
   0x9   :  { %vm70_vm10 = vcmp.lt.s32.totalorder %v33_v12, %v3271_v15  ;;  %vm3283_vm11 = vmand %vm55_vm1, %vm73_vm7  ;;  %vm69_vm12 = vcmp.lt.s32.totalorder %v32_v13, %v3271_v15  ;;  %vm68_vm13 = vcmp.lt.s32.totalorder %v31_v14, %v3271_v15  ;;  %vm49_vm14 = vcmp.ge.s32.totalorder %v30_v16, %v3262_v8 }
   0xa   :  { %vm67_vm15 = vcmp.lt.s32.totalorder %v30_v16, %v3271_v15  ;;  %2700 = vmatpush3.msk.msra.mxu0 %vm3283_vm11, %v4359_v18  ;;  %vm3296_vm0 = vmand %vm54_vm2, %vm72_vm8  ;;  %v2367_v20 = vsel %vm3283_vm11, 1.0, %v4396_v2  ;;  %v29_v21 = vadd.s32 64, %v3248_v4  ;;  %v28_v22 = vadd.s32 56, %v3248_v4 }
   0xb   :  { %v3306_v23 = vadd.s32 48, %v3248_v4  ;;  %2701 = vmatprep.subr.mxu0 %v4396_v2  ;;  %vm3313_vm1 = vmand %vm53_vm3, %vm71_vm9  ;;  %v3317_v25 = vsub.f32 %v2367_v20, %v2367_v20  ;;  %v2366_v26 = vsel %vm3296_vm0, 1.0, %v4396_v2  ;;  %v3323_v27 = vadd.s32 40, %v3248_v4 }
   0xc   :  { %v3326_v28 = vadd.s32 32, %v3248_v4  ;;  %2702 = vmatpush3.msk.msra.mxu0 %vm3296_vm0, %v4359_v18  ;;  %vm3335_vm2 = vmand %vm52_vm4, %vm70_vm10  ;;  %v3339_v30 = vsub.f32 %v2366_v26, %v2366_v26  ;;  %v2365_v31 = vsel %vm3313_vm1, 1.0, %v4396_v2  ;;  %vm48_vm3 = vcmp.ge.s32.totalorder %v29_v21, %v3262_v8 }
   0xd   :  { %vm66_vm7 = vcmp.lt.s32.totalorder %v29_v21, %v3271_v15  ;;  %2703 = vmatprep.subr.mxu0 %v4396_v2  ;;  %vm3351_vm4 = vmand %vm51_vm5, %vm69_vm12  ;;  %v3356_v33 = vand.u32 4294901760, %v3317_v25  ;;  %v3358_v34 = vsub.f32 %v2365_v31, %v2365_v31  ;;  %v2364_v35 = vsel %vm3335_vm2, 1.0, %v4396_v2 }
   0xe   :  { %vm47_vm8 = vcmp.ge.s32.totalorder %v28_v22, %v3262_v8  ;;  %2704 = vmatpush3.msk.msra.mxu0 %vm3313_vm1, %v4359_v18  ;;  %vm3371_vm5 = vmand %vm50_vm6, %vm68_vm13  ;;  %v3376_v37 = vand.u32 4294901760, %v3339_v30  ;;  %v3378_v38 = vsub.f32 %v2364_v35, %v2364_v35  ;;  %vm65_vm9 = vcmp.lt.s32.totalorder %v28_v22, %v3271_v15 }
   0xf   :  { %v4414_v36 = vsel %vm3371_vm5, 4294967295, %v4413_v36  ;;  %v2363_v39 = vsel %vm3351_vm4, 1.0, %v4396_v2  ;;  %2705 = vmatprep.subr.mxu0 %v4396_v2  ;;  %v225_v40 = vsub.f32 %v3317_v25, %v3356_v33  ;;  %v3388_v41 = vand.u32 4294901760, %v3358_v34  ;;  %vm3403_vm10 = vmand %vm49_vm14, %vm67_vm15 }
  0x10   :  { %4415 = vst [vmem:[#allocation8_spill] sm:$0xff] %v3376_v37  ;;  %v3390_v42 = vsub.f32 %v2363_v39, %v2363_v39  ;;  %vm46_vm6 = vcmp.ge.s32.totalorder %v3306_v23, %v3262_v8  ;;  %2706 = vmatpush3.msk.msra.mxu0 %vm3335_vm2, %v4359_v18  ;;  %v232_v43 = vsub.f32 %v3339_v30, %v3376_v37  ;;  %v4418_v44 = vsel %vm3403_vm10, 4294967295, %v4417_v44  ;;  %vm3434_vm13 = vmand %vm48_vm3, %vm66_vm7 }
  0x11   :  { %4416 = vst [vmem:[#allocation9_spill] sm:$0xff] %v3388_v41  ;;  %v3408_v45 = vand.u32 4294901760, %v3378_v38  ;;  %vm64_vm12 = vcmp.lt.s32.totalorder %v3306_v23, %v3271_v15  ;;  %v2362_v46 = vsel %vm3371_vm5, 1.0, %v4396_v2  ;;  %2707 = vmatprep.subr.mxu0 %v4396_v2  ;;  %v3416_v47 = vand.u32 4294901760, %v225_v40  ;;  %vm3452_vm3 = vmand %vm47_vm8, %vm65_vm9 }
  0x12   :  { %v239_v48 = vsub.f32 %v3358_v34, %v3388_v41  ;;  %v3421_v49 = vand.u32 4294901760, %v3390_v42  ;;  %v3423_v50 = vsub.f32 %v2362_v46, %v2362_v46  ;;  %2708 = vmatpush3.msk.msra.mxu0 %vm3351_vm4, %v4359_v18  ;;  %v3428_v51 = vand.u32 4294901760, %v232_v43  ;;  %vm3486_vm9 = vmand %vm46_vm6, %vm64_vm12 }
  0x13   :  { %4419 = vst [vmem:[#allocation10_spill] sm:$0xff] %v3408_v45  ;;  %v4422_v52 = vsel %vm3434_vm13, 4294967295, %v4421_v52  ;;  %v246_v53 = vsub.f32 %v3378_v38, %v3408_v45  ;;  %vm45_vm14 = vcmp.ge.s32.totalorder %v3323_v27, %v3262_v8  ;;  %vm63_vm15 = vcmp.lt.s32.totalorder %v3323_v27, %v3271_v15  ;;  %2709 = vmatprep.subr.mxu0 %v4396_v2 }
  0x14   :  { %4420 = vst [vmem:[#allocation11_spill] sm:$0xff] %v3421_v49  ;;  %2735 = vmatpush3.msra.mxu1 %v3416_v47  ;;  %v3446_v54 = vand.u32 4294901760, %v239_v48  ;;  %v4425_v55 = vsel %vm3452_vm3, 4294967295, %v4424_v55  ;;  %v253_v56 = vsub.f32 %v3390_v42, %v3421_v49  ;;  %v3459_v57 = vand.u32 4294901760, %v3423_v50  ;;  %2710 = vmatpush3.msk.msra.mxu0 %vm3371_vm5, %v4359_v18  ;;  %vm3506_vm6 = vmand %vm45_vm14, %vm63_vm15 }
  0x15   :  { %v2361_v58 = vsel %vm3403_vm10, 1.0, %v4396_v2  ;;  %2736 = vmatprep.subr.mxu1 %v4396_v2  ;;  %v3468_v59 = vand.u32 4294901760, %v246_v53  ;;  %vm44_vm7 = vcmp.ge.s32.totalorder %v3326_v28, %v3262_v8  ;;  %vm62_vm8 = vcmp.lt.s32.totalorder %v3326_v28, %v3271_v15  ;;  %2711 = vmatprep.subr.mxu0 %v4396_v2 }
  0x16   :  { %4423 = vst [vmem:[#allocation12_spill] sm:$0xff] %v3446_v54  ;;  %4426 = vst [vmem:[#allocation13_spill] sm:$0xff] %v3459_v57  ;;  %v3470_v60 = vsub.f32 %v2361_v58, %v2361_v58  ;;  %2737 = vmatpush3.msra.mxu1 %v3428_v51  ;;  %v3478_v61 = vand.u32 4294901760, %v253_v56  ;;  %v4430_v62 = vsel %vm3486_vm9, 4294967295, %v4429_v62  ;;  %v260_v63 = vsub.f32 %v3423_v50, %v3459_v57 }
  0x17   :  { %4427 = vst [vmem:[#allocation14_spill] sm:$0xff] %v3468_v59  ;;  %v2360_v0 = vsel %vm3434_vm13, 1.0, %v4396_v2  ;;  %v24_v7 = vadd.s32 24, %v3248_v4  ;;  %2712 = vmatpush3.msk.msra.mxu0 %vm3403_vm10, %v4359_v18  ;;  %2738 = vmatprep.subr.mxu1 %v4396_v2  ;;  %v2359_v12 = vsel %vm3452_vm3, 1.0, %v4396_v2  ;;  %v23_v13 = vadd.s32 16, %v3248_v4  ;;  %vm3539_vm15 = vmand %vm44_vm7, %vm62_vm8  ;;  %v4489_v17 = vld [vmem:[#allocation8_spill] sm:$0xff] }
  0x18   :  { %4428 = vst [vmem:[#allocation15_spill] sm:$0xff] %v3478_v61  ;;  %v3511_v10 = vand.u32 4294901760, %v3470_v60  ;;  %v3513_v11 = vsub.f32 %v2360_v0, %v2360_v0  ;;  %2713 = vmatprep.subr.mxu0 %v4396_v2  ;;  %2739 = vmatpush3.msra.mxu1 %v3446_v54  ;;  %v3521_v14 = vand.u32 4294901760, %v260_v63  ;;  %v3525_v16 = vsub.f32 %v2359_v12, %v2359_v12  ;;  %v4490_v19 = vld [vmem:[#allocation9_spill] sm:$0xff] }
  0x19   :  { %2714 = vmatpush3.msk.msra.mxu0 %vm3434_vm13, %v4359_v18  ;;  %2740 = vmatprep.subr.mxu1 %v4396_v2  ;;  %vm60_vm14 = vcmp.lt.s32.totalorder %v23_v13, %v3271_v15  ;;  %v2358_v26 = vsel %vm3486_vm9, 1.0, %v4396_v2  ;;  %v22_v27 = vadd.s32 8, %v3248_v4  ;;  %v2357_v28 = vsel %vm3506_vm6, 1.0, %v4396_v2 }
  0x1a   :  { %4433 = vst [vmem:[#allocation16_spill] sm:$0xff] %v3511_v10  ;;  %4434 = vst [vmem:[#allocation17_spill] sm:$0xff] %v3521_v14  ;;  %v267_v20 = vsub.f32 %v3470_v60, %v3511_v10  ;;  %v3544_v22 = vand.u32 4294901760, %v3513_v11  ;;  %2715 = vmatprep.subr.mxu0 %v4396_v2  ;;  %2741 = vmatpush3.msra.mxu1 %v3468_v59  ;;  %v3551_v23 = vand.u32 4294901760, %v3525_v16  ;;  %v4442_v39 = vmov 0  ;;  %v4491_v24 = vld [vmem:[#allocation10_spill] sm:$0xff] }
  0x1b   :  { %2716 = vmatpush3.msk.msra.mxu0 %vm3452_vm3, %v4359_v18  ;;  %2742 = vmatprep.subr.mxu1 %v4396_v2  ;;  %vm4440_vm7 = vcmp.lt.s32.totalorder %v24_v7, %v3271_v15  ;;  %vm4441_vm8 = vcmp.ge.s32.totalorder %v24_v7, %v3262_v8  ;;  %v3576_v40 = vsub.f32 %v2358_v26, %v2358_v26  ;;  %v4445_v48 = vmov 0 }
  0x1c   :  { %4437 = vst [vmem:[#allocation18_spill] sm:$0xff] %v3544_v22  ;;  %4438 = vst [vmem:[#allocation19_spill] sm:$0xff] %v3551_v23  ;;  %v3564_v31 = vand.u32 4294901760, %v267_v20  ;;  %v274_v35 = vsub.f32 %v3513_v11, %v3544_v22  ;;  %v3578_v43 = vsub.f32 %v2357_v28, %v2357_v28  ;;  %2717 = vmatprep.subr.mxu0 %v4396_v2  ;;  %2743 = vmatpush3.msra.mxu1 %v3478_v61  ;;  %v4451_v7 = vmov 0 }
  0x1d   :  { %vm3572_vm12 = vmand %vm4441_vm8, %vm4440_vm7  ;;  %v281_v46 = vsub.f32 %v3525_v16, %v3551_v23  ;;  %vm4444_vm3 = vcmp.ge.s32.totalorder %v23_v13, %v3262_v8  ;;  %vm41_vm7 = vcmp.ge.s32.totalorder %v22_v27, %v3262_v8  ;;  %vm59_vm8 = vcmp.lt.s32.totalorder %v22_v27, %v3271_v15  ;;  %2718 = vmatpush3.msk.msra.mxu0 %vm3486_vm9, %v4359_v18  ;;  %v4493_v29 = vld [vmem:[#allocation13_spill] sm:$0xff] }
  0x1e   :  { %4439 = vst [vmem:[#allocation20_spill] sm:$0xff] %v3564_v31  ;;  %v4443_v39 = vsel %vm3572_vm12, 4294967295, %v4442_v39  ;;  %vm3588_vm13 = vmand %vm4444_vm3, %vm60_vm14  ;;  %v2356_v53 = vsel %vm3539_vm15, 1.0, %v4396_v2  ;;  %2744 = vmatprep.subr.mxu1 %v4396_v2  ;;  %v3602_v56 = vand.u32 4294901760, %v3576_v40  ;;  %v3605_v58 = vand.u32 4294901760, %v3578_v43  ;;  %2719 = vmatprep.subr.mxu0 %v4396_v2 }
  0x1f   :  { %v4446_v48 = vsel %vm3588_vm13, 4294967295, %v4445_v48  ;;  %vm40_vm3 = vcmp.ge.s32.totalorder %v3248_v4, %v3262_v8  ;;  %2745 = vmatpush3.msra.mxu1 %v3521_v14  ;;  %v3611_v63 = vand.u32 4294901760, %v274_v35  ;;  %v3613_v0 = vand.u32 4294901760, %v281_v46  ;;  %vm3615_vm14 = vmand %vm41_vm7, %vm59_vm8  ;;  %2720 = vmatpush3.msk.msra.mxu0 %vm3506_vm6, %v4359_v18 }
  0x20   :  { %4447 = vst [vmem:[#allocation21_spill] sm:$0xff] %v3602_v56  ;;  %4448 = vst [vmem:[#allocation22_spill] sm:$0xff] %v3605_v58  ;;  %v4452_v7 = vsel %vm3615_vm14, 4294967295, %v4451_v7  ;;  %vm58_vm9 = vcmp.lt.s32.totalorder %v3248_v4, %v3271_v15  ;;  %v3621_v12 = vsub.f32 %v2356_v53, %v2356_v53  ;;  %2746 = vmatprep.subr.mxu1 %v4396_v2  ;;  %v4453_v13 = vmov 0  ;;  %2721 = vmatprep.subr.mxu0 %v4396_v2 }
  0x21   :  { %4449 = vst [vmem:[#allocation23_spill] sm:$0xff] %v3611_v63  ;;  %4450 = vst [vmem:[#allocation24_spill] sm:$0xff] %v3613_v0  ;;  %v288_v8 = vsub.f32 %v3576_v40, %v3602_v56  ;;  %v2355_v15 = vsel %vm3572_vm12, 1.0, %v4396_v2  ;;  %v2354_v26 = vsel %vm3588_vm13, 1.0, %v4396_v2  ;;  %2747 = vmatpush3.msra.mxu1 %v3564_v31  ;;  %v295_v27 = vsub.f32 %v3578_v43, %v3605_v58 }
  0x22   :  { %vm3629_vm10 = vmand %vm40_vm3, %vm58_vm9  ;;  %v3645_v28 = vand.u32 4294901760, %v3621_v12  ;;  %v3647_v35 = vsub.f32 %v2355_v15, %v2355_v15  ;;  %v3649_v46 = vsub.f32 %v2354_v26, %v2354_v26  ;;  %2722 = vmatpush3.msk.msra.mxu0 %vm3539_vm15, %v4359_v18  ;;  %2748 = vmatprep.subr.mxu1 %v4396_v2  ;;  %v2353_v53 = vsel %vm3615_vm14, 1.0, %v4396_v2 }
  0x23   :  { %v4454_v13 = vsel %vm3629_vm10, 4294967295, %v4453_v13  ;;  %v2352_v20 = vsel %vm3629_vm10, 1.0, %v4396_v2  ;;  %2723 = vmatprep.subr.mxu0 %v4396_v2  ;;  %2749 = vmatpush3.msra.mxu1 %v3611_v63  ;;  %v3663_v15 = vand.u32 4294901760, %v288_v8  ;;  %v4459_v31 = vmov 1.0   ;;  %v4496_v32 = vld [vmem:[#allocation18_spill] sm:$0xff] }
  0x24   :  { %4455 = vst [vmem:[#allocation25_spill] sm:$0xff] %v3645_v28  ;;  %v302_v26 = vsub.f32 %v3621_v12, %v3645_v28  ;;  %v3668_v18 = vand.u32 4294901760, %v3647_v35  ;;  %v3671_v1 = vand.u32 4294901760, %v3649_v46  ;;  %2724 = vmatpush3.msk.msra.mxu0 %vm3572_vm12, %v4459_v31  ;;  %2750 = vmatprep.subr.mxu1 %v4396_v2  ;;  %v4460_v14 = vand.u32 4294901760, %v3258_v6 }
  0x25   :  { %4456 = vst [vmem:[#allocation26_spill] sm:$0xff] %v3663_v15  ;;  %v3680_v63 = vsub.f32 %v2353_v53, %v2353_v53  ;;  %v3682_v61 = vsub.f32 %v2352_v20, %v2352_v20  ;;  %2725 = vmatprep.subr.mxu0 %v4396_v2  ;;  %2751 = vmatpush3.msra.mxu1 %v3613_v0  ;;  %v3686_v59 = vand.u32 4294901760, %v295_v27  ;;  %vm4464_vm9 = vnez %v4418_v44 }
  0x26   :  { %4457 = vst [vmem:[#allocation27_spill] sm:$0xff] %v3668_v18  ;;  %4458 = vst [vmem:[#allocation28_spill] sm:$0xff] %v3671_v1  ;;  %v214_v8 = vsub.f32 %v3258_v6, %v4460_v14  ;;  %v309_v54 = vsub.f32 %v3647_v35, %v3668_v18  ;;  %2726 = vmatpush3.msk.msra.mxu0 %vm3588_vm13, %v4459_v31  ;;  %2752 = vmatprep.subr.mxu1 %v4396_v2  ;;  %v3699_v20 = vand.u32 4294901760, %v302_v26 }
  0x27   :  { %4461 = vst [vmem:[#allocation29_spill] sm:$0xff] %v3686_v59  ;;  %v3695_v14 = vand.u32 4294901760, %v3680_v63  ;;  %2727 = vmatprep.subr.mxu0 %v4396_v2  ;;  %2753 = vmatpush3.msra.mxu1 %v3663_v15  ;;  %v316_v27 = vsub.f32 %v3649_v46, %v3671_v1  ;;  %v3704_v53 = vand.u32 4294901760, %v3682_v61  ;;  %vm4465_vm7 = vnez %v4422_v52 }
  0x28   :  { %2728 = vmatpush3.msk.msra.mxu0 %vm3615_vm14, %v4459_v31  ;;  %2754 = vmatprep.subr.mxu1 %v4396_v2  ;;  %v215_v0 = vand.u32 4294901760, %v214_v8  ;;  %v3712_v15 = vand.u32 4294901760, %v309_v54  ;;  %vm4466_vm8 = vnez %v4425_v55  ;;  %vm4467_vm3 = vnez %v4430_v62 }
  0x29   :  { %4462 = vst [vmem:[#allocation30_spill] sm:$0xff] %v3695_v14  ;;  %4463 = vst [vmem:[#allocation31_spill] sm:$0xff] %v3704_v53  ;;  %2729 = vmatprep.subr.mxu0 %v4396_v2  ;;  %2755 = vmatpush3.msra.mxu1 %v3686_v59  ;;  %v323_v26 = vsub.f32 %v3680_v63, %v3695_v14  ;;  %v3722_v8 = vand.u32 4294901760, %v316_v27  ;;  %v330_v59 = vsub.f32 %v3682_v61, %v3704_v53 }
  0x2a   :  { %2730 = vmatpush3.msk.msra.mxu0 %vm3629_vm10, %v4459_v31  ;;  %2756 = vmatprep.subr.mxu1 %v4396_v2 }
  0x2b   :  { %2757 = vmatpush3.msra.mxu1 %v3699_v20  ;;  %2769 = vmatprep.subr.mxu0 %v4396_v2  ;;  %v3729_v54 = vand.u32 4294901760, %v323_v26  ;;  %v3735_v27 = vand.u32 4294901760, %v330_v59  ;;  %v4469_v59 = vand.u32 4294901760, %v3258_v6 }
  0x2c   :  { %2732 = vmatmul.mubr.f32.vlgmr.msra.gmra.mxu0 %v215_v0  ;;  %2758 = vmatprep.subr.mxu1 %v4396_v2  ;;  %v122_v0 = vmul.u32 32, %v3248_v4 }
  0x2d   :  { %2770 = vmatpush3.msra.mxu0 %v3317_v25  ;;  %2759 = vmatpush3.msra.mxu1 %v3712_v15  ;;  %v4502_v44 = vld [vmem:[#allocation28_spill] sm:$0xff] }
  0x2e   :  { %2771 = vmatprep.subr.mxu0 %v4396_v2  ;;  %2760 = vmatprep.subr.mxu1 %v4396_v2 }
  0x2f   :  { %2772 = vmatpush3.msra.mxu0 %v3339_v30  ;;  %2761 = vmatpush3.msra.mxu1 %v3722_v8 }
  0x30   :  { %2773 = vmatprep.subr.mxu0 %v4396_v2  ;;  %2762 = vmatprep.subr.mxu1 %v4396_v2  ;;  %v4504_v52 = vld [vmem:[#allocation30_spill] sm:$0xff] }
  0x31   :  { %2774 = vmatpush3.msra.mxu0 %v3358_v34  ;;  %2763 = vmatpush3.msra.mxu1 %v3729_v54 }
  0x32   :  { %2775 = vmatprep.subr.mxu0 %v4396_v2  ;;  %2764 = vmatprep.subr.mxu1 %v4396_v2 }
  0x33   :  { %2776 = vmatpush3.msra.mxu0 %v3378_v38  ;;  %2765 = vmatpush3.msra.mxu1 %v3735_v27 }
  0x34   :  { %2777 = vmatprep.subr.mxu0 %v4396_v2  ;;  %2767 = vmatmul.mubr.f32.vlgmr.msra.gmra.mxu1 %v3246_v3 }
  0x35   :  { %2778 = vmatpush3.msra.mxu0 %v3390_v42  ;;  %2804 = vmatprep.subr.mxu1 %v4396_v2 }
  0x36   :  { %2779 = vmatprep.subr.mxu0 %v4396_v2  ;;  %2805 = vmatpush3.msk.msra.mxu1 %vm3283_vm11, %v4459_v31 }
  0x37   :  { %2780 = vmatpush3.msra.mxu0 %v3423_v50  ;;  %2806 = vmatprep.subr.mxu1 %v4396_v2 }
  0x38   :  { %2781 = vmatprep.subr.mxu0 %v4396_v2  ;;  %2807 = vmatpush3.msk.msra.mxu1 %vm3296_vm0, %v4459_v31 }
  0x39   :  { %2782 = vmatpush3.msra.mxu0 %v3470_v60  ;;  %2808 = vmatprep.subr.mxu1 %v4396_v2 }
  0x3a   :  { %2783 = vmatprep.subr.mxu0 %v4396_v2  ;;  %2809 = vmatpush3.msk.msra.mxu1 %vm3313_vm1, %v4459_v31 }
  0x3b   :  { %2784 = vmatpush3.msra.mxu0 %v3513_v11  ;;  %2810 = vmatprep.subr.mxu1 %v4396_v2 }
  0x3c   :  { %2785 = vmatprep.subr.mxu0 %v4396_v2  ;;  %2811 = vmatpush3.msk.msra.mxu1 %vm3335_vm2, %v4459_v31 }
  0x3d   :  { %2786 = vmatpush3.msra.mxu0 %v3525_v16  ;;  %2812 = vmatprep.subr.mxu1 %v4396_v2 }
  0x3e   :  { %2787 = vmatprep.subr.mxu0 %v4396_v2  ;;  %2813 = vmatpush3.msk.msra.mxu1 %vm3351_vm4, %v4459_v31 }
  0x3f   :  { %2788 = vmatpush3.msra.mxu0 %v3576_v40  ;;  %2814 = vmatprep.subr.mxu1 %v4396_v2 }
  0x40   :  { %2789 = vmatprep.subr.mxu0 %v4396_v2  ;;  %2815 = vmatpush3.msk.msra.mxu1 %vm3371_vm5, %v4459_v31 }
  0x41   :  { %2790 = vmatpush3.msra.mxu0 %v3578_v43  ;;  %2816 = vmatprep.subr.mxu1 %v4396_v2 }
  0x42   :  { %2791 = vmatprep.subr.mxu0 %v4396_v2  ;;  %2817 = vmatpush3.msk.msra.mxu1 %vm4464_vm9, %v4459_v31 }
  0x43   :  { %2792 = vmatpush3.msra.mxu0 %v3621_v12  ;;  %2818 = vmatprep.subr.mxu1 %v4396_v2 }
  0x44   :  { %2793 = vmatprep.subr.mxu0 %v4396_v2  ;;  %2819 = vmatpush3.msk.msra.mxu1 %vm4465_vm7, %v4459_v31 }
  0x45   :  { %2794 = vmatpush3.msra.mxu0 %v3647_v35  ;;  %2820 = vmatprep.subr.mxu1 %v4396_v2 }
  0x46   :  { %2795 = vmatprep.subr.mxu0 %v4396_v2  ;;  %2821 = vmatpush3.msk.msra.mxu1 %vm4466_vm8, %v4459_v31  ;;  %vm4468_vm8 = vmmov 0  }
  0x47   :  { %2796 = vmatpush3.msra.mxu0 %v3649_v46  ;;  %2822 = vmatprep.subr.mxu1 %v4396_v2 }
  0x48   :  { %2797 = vmatprep.subr.mxu0 %v4396_v2  ;;  %2823 = vmatpush3.msk.msra.mxu1 %vm4467_vm3, %v4459_v31 }
  0x49   :  { %2798 = vmatpush3.msra.mxu0 %v3680_v63  ;;  %2824 = vmatprep.subr.mxu1 %v4396_v2 }
  0x4a   :  { %2799 = vmatprep.subr.mxu0 %v4396_v2  ;;  %2825 = vmatpush3.msk.msra.mxu1 %vm3506_vm6, %v4459_v31 }
  0x4b   :  { %2800 = vmatpush3.msra.mxu0 %v3682_v61  ;;  %2801 = vmatprep.mubr.msk.f32.mxu0 %vm4468_vm8, %v4396_v2 }
  0x4c   :  { %2826 = vmatprep.subr.mxu1 %v4396_v2  ;;  %2802 = vmatmul.mubr.f32.vlgmr.msra.gmra.mxu0 %v3258_v6  ;;  %v124_v6 = vadd.s32 1, %v3248_v4 }
  0x4d   :  { %2827 = vmatpush3.msk.msra.mxu1 %vm3539_vm15, %v4459_v31  ;;  %2839 = vmatprep.subr.mxu0 %v4396_v2 }
  0x4e   :  { %2828 = vmatprep.subr.mxu1 %v4396_v2  ;;  %2840 = vmatpush3.msra.mxu0 %v3356_v33  ;;  %v125_v26 = vmul.u32 32, %v124_v6 }
  0x4f   :  { %2829 = vmatpush3.msk.msra.mxu1 %vm3572_vm12, %v4459_v31  ;;  %2841 = vmatprep.subr.mxu0 %v4396_v2 }
  0x50   :  { %2830 = vmatprep.subr.mxu1 %v4396_v2  ;;  %2842 = vmatpush3.msra.mxu0 %v3376_v37 }
  0x51   :  { %2831 = vmatpush3.msk.msra.mxu1 %vm3588_vm13, %v4459_v31  ;;  %2843 = vmatprep.subr.mxu0 %v4396_v2 }
  0x52   :  { %2832 = vmatprep.subr.mxu1 %v4396_v2  ;;  %2844 = vmatpush3.msra.mxu0 %v3388_v41 }
  0x53   :  { %2833 = vmatpush3.msk.msra.mxu1 %vm3615_vm14, %v4459_v31  ;;  %2845 = vmatprep.subr.mxu0 %v4396_v2 }
  0x54   :  { %2834 = vmatprep.subr.mxu1 %v4396_v2  ;;  %2846 = vmatpush3.msra.mxu0 %v3408_v45 }
  0x55   :  { %2835 = vmatpush3.msk.msra.mxu1 %vm3629_vm10, %v4459_v31  ;;  %2836 = vmatprep.mubr.msk.f32.mxu1 %vm4468_vm8, %v4396_v2 }
  0x56   :  { %2847 = vmatprep.subr.mxu0 %v4396_v2  ;;  %2837 = vmatmul.mubr.f32.vlgmr.msra.gmra.mxu1 %v4469_v59 }
  0x57   :  { %2848 = vmatpush3.msra.mxu0 %v3421_v49  ;;  %2874 = vmatprep.subr.mxu1 %v4396_v2 }
  0x58   :  { %2849 = vmatprep.subr.mxu0 %v4396_v2  ;;  %2875 = vmatpush3.msk.msra.mxu1 %vm3283_vm11, %v4459_v31 }
  0x59   :  { %2850 = vmatpush3.msra.mxu0 %v3459_v57  ;;  %2876 = vmatprep.subr.mxu1 %v4396_v2 }
  0x5a   :  { %2851 = vmatprep.subr.mxu0 %v4396_v2  ;;  %2877 = vmatpush3.msk.msra.mxu1 %vm3296_vm0, %v4459_v31 }
  0x5b   :  { %2852 = vmatpush3.msra.mxu0 %v3511_v10  ;;  %2878 = vmatprep.subr.mxu1 %v4396_v2 }
  0x5c   :  { %2853 = vmatprep.subr.mxu0 %v4396_v2  ;;  %2879 = vmatpush3.msk.msra.mxu1 %vm3313_vm1, %v4459_v31 }
  0x5d   :  { %2854 = vmatpush3.msra.mxu0 %v3544_v22  ;;  %2880 = vmatprep.subr.mxu1 %v4396_v2 }
  0x5e   :  { %2855 = vmatprep.subr.mxu0 %v4396_v2  ;;  %2881 = vmatpush3.msk.msra.mxu1 %vm3335_vm2, %v4459_v31 }
  0x5f   :  { %2856 = vmatpush3.msra.mxu0 %v3551_v23  ;;  %2882 = vmatprep.subr.mxu1 %v4396_v2 }
  0x60   :  { %2857 = vmatprep.subr.mxu0 %v4396_v2  ;;  %2883 = vmatpush3.msk.msra.mxu1 %vm3351_vm4, %v4459_v31 }
  0x61   :  { %2858 = vmatpush3.msra.mxu0 %v3602_v56  ;;  %2884 = vmatprep.subr.mxu1 %v4396_v2 }
  0x62   :  { %2859 = vmatprep.subr.mxu0 %v4396_v2  ;;  %2885 = vmatpush3.msk.msra.mxu1 %vm3371_vm5, %v4459_v31  ;;  %vm4470_vm5 = vnez %v4425_v55  ;;  %v4505_v55 = vld [vmem:[#allocation31_spill] sm:$0xff] }
  0x63   :  { %2860 = vmatpush3.msra.mxu0 %v3605_v58  ;;  %2886 = vmatprep.subr.mxu1 %v4396_v2 }
  0x64   :  { %2861 = vmatprep.subr.mxu0 %v4396_v2  ;;  %2887 = vmatpush3.msk.msra.mxu1 %vm4464_vm9, %v4459_v31 }
  0x65   :  { %2862 = vmatpush3.msra.mxu0 %v3645_v28  ;;  %2888 = vmatprep.subr.mxu1 %v4396_v2 }
  0x66   :  { %2863 = vmatprep.subr.mxu0 %v4396_v2  ;;  %2889 = vmatpush3.msk.msra.mxu1 %vm4465_vm7, %v4459_v31 }
  0x67   :  { %2864 = vmatpush3.msra.mxu0 %v3668_v18  ;;  %2890 = vmatprep.subr.mxu1 %v4396_v2 }
  0x68   :  { %2865 = vmatprep.subr.mxu0 %v4396_v2  ;;  %2891 = vmatpush3.msk.msra.mxu1 %vm4470_vm5, %v4459_v31 }
  0x69   :  { %2866 = vmatpush3.msra.mxu0 %v3671_v1  ;;  %2892 = vmatprep.subr.mxu1 %v4396_v2 }
  0x6a   :  { %2867 = vmatprep.subr.mxu0 %v4396_v2  ;;  %2893 = vmatpush3.msk.msra.mxu1 %vm4467_vm3, %v4459_v31 }
  0x6b   :  { %2868 = vmatpush3.msra.mxu0 %v3695_v14  ;;  %2894 = vmatprep.subr.mxu1 %v4396_v2 }
  0x6c   :  { %2869 = vmatprep.subr.mxu0 %v4396_v2  ;;  %2895 = vmatpush3.msk.msra.mxu1 %vm3506_vm6, %v4459_v31 }
  0x6d   :  { %2870 = vmatpush3.msra.mxu0 %v3704_v53  ;;  %2871 = vmatprep.mubr.msk.f32.mxu0 %vm4468_vm8, %v4396_v2 }
  0x6e   :  { %2896 = vmatprep.subr.mxu1 %v4396_v2  ;;  %2872 = vmatmul.mubr.f32.vlgmr.msra.gmra.mxu0 %v3246_v3 }
  0x6f   :  { %2897 = vmatpush3.msk.msra.mxu1 %vm3539_vm15, %v4459_v31  ;;  %2906 = vmatprep.mubr.msk.f32.mxu1 %vm4468_vm8, %v4396_v2 }
  0x70   :  { %2898 = vmatprep.subr.mxu1 %v4396_v2  ;;  %2909 = vmatprep.subr.mxu0 %v4396_v2 }
  0x71   :  { %2899 = vmatpush3.msk.msra.mxu1 %vm3572_vm12, %v4459_v31  ;;  %2911 = vmatprep.mubr.msk.f32.mxu0 %vm4468_vm8, %v4396_v2 }
  0x72   :  { %2900 = vmatprep.subr.mxu1 %v4396_v2 }
  0x73   :  { %2901 = vmatpush3.msk.msra.mxu1 %vm3588_vm13, %v4459_v31  ;;  %vm126_vm13 = vcmp.lt.s32.totalorder %v3250_v5, %v125_v26 }
  0x74   :  { %2902 = vmatprep.subr.mxu1 %v4396_v2 }
  0x75   :  { %2903 = vmatpush3.msk.msra.mxu1 %vm3615_vm14, %v4459_v31  ;;  %vm123_vm14 = vcmp.ge.s32.totalorder %v3250_v5, %v122_v0 }
  0x76   :  { %2904 = vmatprep.subr.mxu1 %v4396_v2  ;;  %vm127_vm12 = vmand %vm123_vm14, %vm126_vm13  ;;  %vm4399_vm13 = vcmask 31744   ;;  %vm4483_vm14 = vnez %v4443_v39 }
  0x77   :  { %2905 = vmatpush3.msk.msra.mxu1 %vm3629_vm10, %v4459_v31  ;;  %v3954_v59 = vsel %vm127_vm12, 1.0, %v4396_v2  ;;  %vm4400_vm10 = vcmask 1043456   ;;  %vm4480_vm12 = vnez %v4414_v36  ;;  %v4499_v36 = vld [vmem:[#allocation22_spill] sm:$0xff] }
  0x78   :  { %2907 = vmatmul.mubr.f32.vlgmr.msra.gmra.mxu1 %v3246_v3  ;;  %2914 = vmatprep.subr.mxu1 %v4396_v2  ;;  %v778_v3 = vsel %vm4400_vm10, %v3954_v59, 0 }
  0x79   :  { %2916 = vmatprep.mubr.msk.f32.mxu1 %vm4468_vm8, %v4396_v2  ;;  %2910 = vmatpush3.msk.msra.mxu0 %vm4400_vm10, %v3954_v59  ;;  %v3960_v53 = vsub.f32 %v778_v3, %v778_v3 }
  0x7a   :  { %2919 = vmatprep.subr.mxu0 %v4396_v2 }
  0x7b   :  { %v3964_v4 = vand.u32 4294901760, %v3960_v53 }
  0x7d   :  { %v890_v5 = vsub.f32 %v3960_v53, %v3964_v4 }
  0x7f   :  { %v3968_v6 = vand.u32 4294901760, %v890_v5 }
  0x81   :  { %4471 = vst [vmem:[#allocation32_spill] sm:$0xff] %v3968_v6  ;;  %2915 = vmatpush3.msra.mxu1 %v3968_v6 }
  0x82   :  { %2924 = vmatprep.subr.mxu1 %v4396_v2 }
  0xec   :  { %v217_v0 = vpop.f32.mrf.mxu0 }
  0xee   :  { %v2733_v26 = vpop.f32.mrf.mxu0 }
  0xf4   :  { %v368_v14 = vpop.f32.mrf.mxu1 }
  0xf5   :  { %v369_v22 = vadd.f32 %v368_v14, %v217_v0 }
  0xf6   :  { %v2768_v1 = vpop.f32.mrf.mxu1 }
  0xf7   :  { %v4472_v1 = vmov 0.0  }
 0x10c   :  { %v472_v3 = vpop.f32.mrf.mxu0 }
 0x10d   :  { %v473_v10 = vadd.f32 %v472_v3, %v369_v22  ;;  %v4481_v22 = vld [vmem:[#allocation26_spill] sm:$0xff] }
 0x10e   :  { %v2803_v18 = vpop.f32.mrf.mxu0 }
 0x116   :  { %v561_v28 = vpop.f32.mrf.mxu1 }
 0x117   :  { %v562_v57 = vadd.f32 %v561_v28, %v473_v10  ;;  %v4479_v10 = vld [vmem:[#allocation24_spill] sm:$0xff] }
 0x118   :  { %v2838_v58 = vpop.f32.mrf.mxu1 }
 0x12e   :  { %v680_v56 = vpop.f32.mrf.mxu0 }
 0x12f   :  { %v681_v49 = vadd.f32 %v680_v56, %v562_v57 }
 0x130   :  { %v2873_v23 = vpop.f32.mrf.mxu0 }
 0x131   :  { %v4482_v23 = vld [vmem:[#allocation29_spill] sm:$0xff] }
 0x138   :  { %v767_v5 = vpop.f32.mrf.mxu1 }
 0x139   :  { %v768_v45 = vadd.f32 %v767_v5, %v681_v49  ;;  %v4477_v49 = vld [vmem:[#allocation20_spill] sm:$0xff] }
 0x13a   :  { %v2908_v6 = vpop.f32.mrf.mxu1 }
 0x13b   :  { %v771_v41 = vmul.f32 0.03125, %v768_v45  ;;  %v4474_v45 = vld [vmem:[#allocation14_spill] sm:$0xff] }
 0x13d   :  { %v774_v2 = vsel %vm4399_vm13, %v771_v41, 0  ;;  %vm4484_vm13 = vnez %v4446_v48 }
 0x13e   :  { %v846_v26 = vand.u32 4294901760, %v774_v2 }
 0x140   :  { %v847_v37 = vsub.f32 %v774_v2, %v846_v26  ;;  %2917 = vmatmul.mubr.f32.vlgmr.msra.gmra.mxu1 %v846_v26  ;;  %v4473_v2 = vld [vmem:[#allocation12_spill] sm:$0xff] }
 0x141   :  { %2925 = vmatpush3.msk.msra.mxu1 %vm4400_vm10, %v3954_v59  ;;  %2926 = vmatprep.mubr.msk.f32.mxu1 %vm4468_vm8, %v4472_v1 }
 0x142   :  { %v848_v18 = vand.u32 4294901760, %v847_v37  ;;  %2934 = vmatprep.subr.mxu1 %v4472_v1 }
 0x144   :  { %2927 = vmatmul.mubr.f32.vlgmr.msra.gmra.mxu1 %v848_v18  ;;  %v849_v57 = vsub.f32 %v847_v37, %v848_v18 }
 0x145   :  { %2935 = vmatpush3.msk.msra.mxu1 %vm4400_vm10, %v3954_v59  ;;  %2936 = vmatprep.mubr.msk.f32.mxu1 %vm4468_vm8, %v4472_v1  ;;  %vm4485_vm10 = vnez %v4452_v7 }
 0x146   :  { %v850_v41 = vand.u32 4294901760, %v849_v57  ;;  %2974 = vmatprep.subr.mxu1 %v4472_v1 }
 0x148   :  { %2912 = vmatmul.mubr.f32.vlgmr.msra.gmra.mxu0 %v850_v41  ;;  %2937 = vmatmul.mubr.f32.vlgmr.msra.gmra.mxu1 %v846_v26 }
 0x149   :  { %2920 = vmatpush3.msra.mxu0 %v3960_v53  ;;  %2921 = vmatprep.mubr.msk.f32.mxu0 %vm4468_vm8, %v4472_v1 }
 0x14a   :  { %2929 = vmatprep.subr.mxu0 %v4472_v1  ;;  %2975 = vmatpush3.msra.mxu1 %v3416_v47  ;;  %v4476_v47 = vld [vmem:[#allocation17_spill] sm:$0xff] }
 0x14b   :  { %2976 = vmatprep.subr.mxu1 %v4472_v1  ;;  %3006 = vmatprep.mubr.msk.f32.mxu1 %vm4468_vm8, %v4472_v1 }
 0x14c   :  { %2922 = vmatmul.mubr.f32.vlgmr.msra.gmra.mxu0 %v847_v37  ;;  %2977 = vmatpush3.msra.mxu1 %v3428_v51  ;;  %v4475_v37 = vld [vmem:[#allocation15_spill] sm:$0xff] }
 0x14d   :  { %2930 = vmatpush3.msra.mxu0 %v3964_v4  ;;  %2931 = vmatprep.mubr.msk.f32.mxu0 %vm4468_vm8, %v4472_v1  ;;  %v4478_v51 = vld [vmem:[#allocation23_spill] sm:$0xff] }
 0x14e   :  { %2978 = vmatprep.subr.mxu1 %v4472_v1  ;;  %2939 = vmatprep.subr.mxu0 %v4472_v1 }
 0x14f   :  { %2979 = vmatpush3.msra.mxu1 %v4473_v2  ;;  %v4487_v2 = vld [vmem:[#allocation7_spill] sm:$0xff] }
 0x150   :  { %2932 = vmatmul.mubr.f32.vlgmr.msra.gmra.mxu0 %v846_v26  ;;  %2980 = vmatprep.subr.mxu1 %v4472_v1 }
 0x151   :  { %2981 = vmatpush3.msra.mxu1 %v4474_v45  ;;  %2940 = vmatpush3.msk.msra.mxu0 %vm3283_vm11, %v4459_v31 }
 0x152   :  { %2982 = vmatprep.subr.mxu1 %v4472_v1  ;;  %2941 = vmatprep.subr.mxu0 %v4472_v1 }
 0x153   :  { %2983 = vmatpush3.msra.mxu1 %v4475_v37  ;;  %2942 = vmatpush3.msk.msra.mxu0 %vm3296_vm0, %v4459_v31 }
 0x154   :  { %2984 = vmatprep.subr.mxu1 %v4472_v1  ;;  %2943 = vmatprep.subr.mxu0 %v4472_v1 }
 0x155   :  { %2985 = vmatpush3.msra.mxu1 %v4476_v47  ;;  %2944 = vmatpush3.msk.msra.mxu0 %vm3313_vm1, %v4459_v31 }
 0x156   :  { %2986 = vmatprep.subr.mxu1 %v4472_v1  ;;  %2945 = vmatprep.subr.mxu0 %v4472_v1 }
 0x157   :  { %2987 = vmatpush3.msra.mxu1 %v4477_v49  ;;  %2946 = vmatpush3.msk.msra.mxu0 %vm3335_vm2, %v4459_v31 }
 0x158   :  { %2988 = vmatprep.subr.mxu1 %v4472_v1  ;;  %2947 = vmatprep.subr.mxu0 %v4472_v1 }
 0x159   :  { %2989 = vmatpush3.msra.mxu1 %v4478_v51  ;;  %2948 = vmatpush3.msk.msra.mxu0 %vm3351_vm4, %v4459_v31 }
 0x15a   :  { %2990 = vmatprep.subr.mxu1 %v4472_v1  ;;  %2949 = vmatprep.subr.mxu0 %v4472_v1 }
 0x15b   :  { %2991 = vmatpush3.msra.mxu1 %v4479_v10  ;;  %2950 = vmatpush3.msk.msra.mxu0 %vm4480_vm12, %v4459_v31 }
 0x15c   :  { %2992 = vmatprep.subr.mxu1 %v4472_v1  ;;  %2951 = vmatprep.subr.mxu0 %v4472_v1 }
 0x15d   :  { %2993 = vmatpush3.msra.mxu1 %v4481_v22  ;;  %2952 = vmatpush3.msk.msra.mxu0 %vm4464_vm9, %v4459_v31 }
 0x15e   :  { %2994 = vmatprep.subr.mxu1 %v4472_v1  ;;  %2953 = vmatprep.subr.mxu0 %v4472_v1 }
 0x15f   :  { %2995 = vmatpush3.msra.mxu1 %v4482_v23  ;;  %2954 = vmatpush3.msk.msra.mxu0 %vm4465_vm7, %v4459_v31 }
 0x160   :  { %2996 = vmatprep.subr.mxu1 %v4472_v1  ;;  %2955 = vmatprep.subr.mxu0 %v4472_v1 }
 0x161   :  { %2997 = vmatpush3.msra.mxu1 %v3699_v20  ;;  %2956 = vmatpush3.msk.msra.mxu0 %vm4470_vm5, %v4459_v31 }
 0x162   :  { %2998 = vmatprep.subr.mxu1 %v4472_v1  ;;  %2957 = vmatprep.subr.mxu0 %v4472_v1 }
 0x163   :  { %2999 = vmatpush3.msra.mxu1 %v3712_v15  ;;  %2958 = vmatpush3.msk.msra.mxu0 %vm4467_vm3, %v4459_v31 }
 0x164   :  { %3000 = vmatprep.subr.mxu1 %v4472_v1  ;;  %2959 = vmatprep.subr.mxu0 %v4472_v1 }
 0x165   :  { %3001 = vmatpush3.msra.mxu1 %v3722_v8  ;;  %2960 = vmatpush3.msk.msra.mxu0 %vm3506_vm6, %v4459_v31 }
 0x166   :  { %3002 = vmatprep.subr.mxu1 %v4472_v1  ;;  %2961 = vmatprep.subr.mxu0 %v4472_v1 }
 0x167   :  { %3003 = vmatpush3.msra.mxu1 %v3729_v54  ;;  %2962 = vmatpush3.msk.msra.mxu0 %vm3539_vm15, %v4459_v31 }
 0x168   :  { %3004 = vmatprep.subr.mxu1 %v4472_v1  ;;  %2963 = vmatprep.subr.mxu0 %v4472_v1 }
 0x169   :  { %3005 = vmatpush3.msra.mxu1 %v3735_v27  ;;  %2964 = vmatpush3.msk.msra.mxu0 %vm4483_vm14, %v4459_v31  ;;  %vm4486_vm14 = vnez %v4454_v13 }
 0x16a   :  { %3044 = vmatprep.subr.mxu1 %v4472_v1  ;;  %2965 = vmatprep.subr.mxu0 %v4472_v1 }
 0x16b   :  { %2966 = vmatpush3.msk.msra.mxu0 %vm4484_vm13, %v4459_v31  ;;  %2971 = vmatprep.mubr.msk.f32.mxu0 %vm4468_vm8, %v4472_v1 }
 0x16c   :  { %2967 = vmatprep.subr.mxu0 %v4472_v1 }
 0x16d   :  { %2968 = vmatpush3.msk.msra.mxu0 %vm4485_vm10, %v4459_v31 }
 0x16e   :  { %2969 = vmatprep.subr.mxu0 %v4472_v1 }
 0x16f   :  { %2970 = vmatpush3.msk.msra.mxu0 %vm4486_vm14, %v4459_v31 }
 0x170   :  { %3009 = vmatprep.subr.mxu0 %v4472_v1 }
 0x200   :  { %v928_v56 = vpop.f32.mrf.mxu1 }
 0x202   :  { %v2918_v58 = vpop.f32.mrf.mxu1 }
 0x204   :  { %v1076_v28 = vpop.f32.mrf.mxu1 }
 0x206   :  { %v2928_v15 = vpop.f32.mrf.mxu1 }
 0x208   :  { %v852_v14 = vpop.f32.mrf.mxu0  ;;  %v1222_v20 = vpop.f32.mrf.mxu1 }
 0x209   :  { %v929_v27 = vadd.f32 %v928_v56, %v852_v14 }
 0x20a   :  { %v2913_v8 = vpop.f32.mrf.mxu0  ;;  %v2938_v54 = vpop.f32.mrf.mxu1 }
 0x20c   :  { %v1002_v6 = vpop.f32.mrf.mxu0 }
 0x20d   :  { %v1003_v0 = vadd.f32 %v1002_v6, %v929_v27 }
 0x20e   :  { %v2923_v3 = vpop.f32.mrf.mxu0 }
 0x20f   :  { %v1077_v5 = vadd.f32 %v1076_v28, %v1003_v0 }
 0x210   :  { %v1150_v26 = vpop.f32.mrf.mxu0 }
 0x211   :  { %v1151_v18 = vadd.f32 %v1150_v26, %v1077_v5 }
 0x212   :  { %v2933_v57 = vpop.f32.mrf.mxu0 }
 0x213   :  { %v4091_v41 = vadd.f32 %v1222_v20, %v1151_v18  ;;  %v1878_v20 = vstv %s4345_s0 }
 0x215   :  { %v1226_v45 = vsub.f32 %v4487_v2, %v4091_v41 }
 0x217   :  { %v1227_v37 = vmul.f32 %v1226_v45, %v1226_v45 }
 0x219   :  { %v4095_v47 = vand.u32 4294901760, %v1227_v37 }
 0x21b   :  { %v4098_v49 = vsub.f32 %v1227_v37, %v4095_v47  ;;  %3007 = vmatmul.mubr.f32.vlgmr.msra.gmra.mxu1 %v4095_v47 }
 0x21c   :  { %3045 = vmatpush3.msk.msra.mxu1 %vm3283_vm11, %v4459_v31  ;;  %3076 = vmatprep.mubr.msk.f32.mxu1 %vm4468_vm8, %v4472_v1 }
 0x21d   :  { %3046 = vmatprep.subr.mxu1 %v4472_v1  ;;  %v1311_v51 = vand.u32 4294901760, %v4098_v49 }
 0x21e   :  { %3047 = vmatpush3.msk.msra.mxu1 %vm3296_vm0, %v4459_v31 }
 0x21f   :  { %3048 = vmatprep.subr.mxu1 %v4472_v1  ;;  %v1312_v10 = vsub.f32 %v4098_v49, %v1311_v51 }
 0x220   :  { %3049 = vmatpush3.msk.msra.mxu1 %vm3313_vm1, %v4459_v31 }
 0x221   :  { %3050 = vmatprep.subr.mxu1 %v4472_v1  ;;  %v1313_v22 = vand.u32 4294901760, %v1312_v10 }
 0x222   :  { %3051 = vmatpush3.msk.msra.mxu1 %vm3335_vm2, %v4459_v31 }
 0x223   :  { %3052 = vmatprep.subr.mxu1 %v4472_v1  ;;  %2972 = vmatmul.mubr.f32.vlgmr.msra.gmra.mxu0 %v1313_v22 }
 0x224   :  { %3010 = vmatpush3.msra.mxu0 %v3317_v25  ;;  %3053 = vmatpush3.msk.msra.mxu1 %vm3351_vm4, %v4459_v31  ;;  %v4492_v25 = vld [vmem:[#allocation11_spill] sm:$0xff] }
 0x225   :  { %3011 = vmatprep.subr.mxu0 %v4472_v1  ;;  %3054 = vmatprep.subr.mxu1 %v4472_v1 }
 0x226   :  { %3012 = vmatpush3.msra.mxu0 %v3339_v30  ;;  %3055 = vmatpush3.msk.msra.mxu1 %vm4480_vm12, %v4459_v31  ;;  %v4495_v30 = vld [vmem:[#allocation16_spill] sm:$0xff] }
 0x227   :  { %3013 = vmatprep.subr.mxu0 %v4472_v1  ;;  %3056 = vmatprep.subr.mxu1 %v4472_v1 }
 0x228   :  { %3014 = vmatpush3.msra.mxu0 %v3358_v34  ;;  %3057 = vmatpush3.msk.msra.mxu1 %vm4464_vm9, %v4459_v31  ;;  %v4498_v34 = vld [vmem:[#allocation21_spill] sm:$0xff] }
 0x229   :  { %3015 = vmatprep.subr.mxu0 %v4472_v1  ;;  %3058 = vmatprep.subr.mxu1 %v4472_v1 }
 0x22a   :  { %3016 = vmatpush3.msra.mxu0 %v3378_v38  ;;  %3059 = vmatpush3.msk.msra.mxu1 %vm4465_vm7, %v4459_v31  ;;  %v4500_v38 = vld [vmem:[#allocation25_spill] sm:$0xff] }
 0x22b   :  { %3017 = vmatprep.subr.mxu0 %v4472_v1  ;;  %3060 = vmatprep.subr.mxu1 %v4472_v1 }
 0x22c   :  { %3018 = vmatpush3.msra.mxu0 %v3390_v42  ;;  %3061 = vmatpush3.msk.msra.mxu1 %vm4470_vm5, %v4459_v31  ;;  %v4501_v42 = vld [vmem:[#allocation27_spill] sm:$0xff] }
 0x22d   :  { %3019 = vmatprep.subr.mxu0 %v4472_v1  ;;  %3062 = vmatprep.subr.mxu1 %v4472_v1 }
 0x22e   :  { %3020 = vmatpush3.msra.mxu0 %v3423_v50  ;;  %3063 = vmatpush3.msk.msra.mxu1 %vm4467_vm3, %v4459_v31  ;;  %vm4488_vm3 = vnez %v4443_v39  ;;  %v4503_v50 = vld [vmem:[#allocation32_spill] sm:$0xff] }
 0x22f   :  { %3021 = vmatprep.subr.mxu0 %v4472_v1  ;;  %3064 = vmatprep.subr.mxu1 %v4472_v1 }
 0x230   :  { %3022 = vmatpush3.msra.mxu0 %v3470_v60  ;;  %3065 = vmatpush3.msk.msra.mxu1 %vm3506_vm6, %v4459_v31 }
 0x231   :  { %3023 = vmatprep.subr.mxu0 %v4472_v1  ;;  %3066 = vmatprep.subr.mxu1 %v4472_v1 }
 0x232   :  { %3024 = vmatpush3.msra.mxu0 %v3513_v11  ;;  %3067 = vmatpush3.msk.msra.mxu1 %vm3539_vm15, %v4459_v31 }
 0x233   :  { %3025 = vmatprep.subr.mxu0 %v4472_v1  ;;  %3068 = vmatprep.subr.mxu1 %v4472_v1 }
 0x234   :  { %3026 = vmatpush3.msra.mxu0 %v3525_v16  ;;  %3069 = vmatpush3.msk.msra.mxu1 %vm4488_vm3, %v4459_v31 }
 0x235   :  { %3027 = vmatprep.subr.mxu0 %v4472_v1  ;;  %3070 = vmatprep.subr.mxu1 %v4472_v1 }
 0x236   :  { %3028 = vmatpush3.msra.mxu0 %v3576_v40  ;;  %3071 = vmatpush3.msk.msra.mxu1 %vm4484_vm13, %v4459_v31 }
 0x237   :  { %3029 = vmatprep.subr.mxu0 %v4472_v1  ;;  %3072 = vmatprep.subr.mxu1 %v4472_v1 }
 0x238   :  { %3030 = vmatpush3.msra.mxu0 %v3578_v43  ;;  %3073 = vmatpush3.msk.msra.mxu1 %vm4485_vm10, %v4459_v31 }
 0x239   :  { %3031 = vmatprep.subr.mxu0 %v4472_v1  ;;  %3074 = vmatprep.subr.mxu1 %v4472_v1 }
 0x23a   :  { %3032 = vmatpush3.msra.mxu0 %v3621_v12  ;;  %3075 = vmatpush3.msk.msra.mxu1 %vm4486_vm14, %v4459_v31 }
 0x23b   :  { %3033 = vmatprep.subr.mxu0 %v4472_v1  ;;  %3077 = vmatmul.mubr.f32.vlgmr.msra.gmra.mxu1 %v1311_v51 }
 0x23c   :  { %3114 = vmatprep.subr.mxu1 %v4472_v1  ;;  %3034 = vmatpush3.msra.mxu0 %v3647_v35 }
 0x23d   :  { %3115 = vmatpush3.msk.msra.mxu1 %vm3283_vm11, %v4459_v31  ;;  %3035 = vmatprep.subr.mxu0 %v4472_v1  ;;  %vm4506_vm11 = vcmask 1043456  }
 0x23e   :  { %3116 = vmatprep.subr.mxu1 %v4472_v1  ;;  %3036 = vmatpush3.msra.mxu0 %v3649_v46 }
 0x23f   :  { %3117 = vmatpush3.msk.msra.mxu1 %vm3296_vm0, %v4459_v31  ;;  %3037 = vmatprep.subr.mxu0 %v4472_v1  ;;  %vm4494_vm0 = vnez %v4430_v62 }
 0x240   :  { %3118 = vmatprep.subr.mxu1 %v4472_v1  ;;  %3038 = vmatpush3.msra.mxu0 %v3680_v63 }
 0x241   :  { %3119 = vmatpush3.msk.msra.mxu1 %vm3313_vm1, %v4459_v31  ;;  %3039 = vmatprep.subr.mxu0 %v4472_v1 }
 0x242   :  { %3120 = vmatprep.subr.mxu1 %v4472_v1  ;;  %3040 = vmatpush3.msra.mxu0 %v3682_v61 }
 0x243   :  { %3041 = vmatprep.mubr.msk.f32.mxu0 %vm4468_vm8, %v4472_v1  ;;  %3121 = vmatpush3.msk.msra.mxu1 %vm3335_vm2, %v4459_v31 }
 0x244   :  { %3042 = vmatmul.mubr.f32.vlgmr.msra.gmra.mxu0 %v4098_v49  ;;  %3079 = vmatprep.subr.mxu0 %v4472_v1 }
 0x245   :  { %3122 = vmatprep.subr.mxu1 %v4472_v1  ;;  %3080 = vmatpush3.msra.mxu0 %v3356_v33  ;;  %v4497_v33 = vld [vmem:[#allocation19_spill] sm:$0xff] }
 0x246   :  { %3123 = vmatpush3.msk.msra.mxu1 %vm3351_vm4, %v4459_v31  ;;  %3081 = vmatprep.subr.mxu0 %v4472_v1  ;;  %vm4507_vm4 = vcmask 31744  }
 0x247   :  { %3124 = vmatprep.subr.mxu1 %v4472_v1  ;;  %3082 = vmatpush3.msra.mxu0 %v4489_v17 }
 0x248   :  { %3125 = vmatpush3.msk.msra.mxu1 %vm4480_vm12, %v4459_v31  ;;  %3083 = vmatprep.subr.mxu0 %v4472_v1 }
 0x249   :  { %3126 = vmatprep.subr.mxu1 %v4472_v1  ;;  %3084 = vmatpush3.msra.mxu0 %v4490_v19 }
 0x24a   :  { %3127 = vmatpush3.msk.msra.mxu1 %vm4464_vm9, %v4459_v31  ;;  %3085 = vmatprep.subr.mxu0 %v4472_v1 }
 0x24b   :  { %3128 = vmatprep.subr.mxu1 %v4472_v1  ;;  %3086 = vmatpush3.msra.mxu0 %v4491_v24 }
 0x24c   :  { %3129 = vmatpush3.msk.msra.mxu1 %vm4465_vm7, %v4459_v31  ;;  %3087 = vmatprep.subr.mxu0 %v4472_v1 }
 0x24d   :  { %3130 = vmatprep.subr.mxu1 %v4472_v1  ;;  %3088 = vmatpush3.msra.mxu0 %v4492_v25 }
 0x24e   :  { %3131 = vmatpush3.msk.msra.mxu1 %vm4470_vm5, %v4459_v31  ;;  %3089 = vmatprep.subr.mxu0 %v4472_v1  ;;  %vm4508_vm5 = vmmov %vm4506_vm11 }
 0x24f   :  { %3132 = vmatprep.subr.mxu1 %v4472_v1  ;;  %3090 = vmatpush3.msra.mxu0 %v4493_v29 }
 0x250   :  { %3133 = vmatpush3.msk.msra.mxu1 %vm4494_vm0, %v4459_v31  ;;  %3091 = vmatprep.subr.mxu0 %v4472_v1 }
 0x251   :  { %3134 = vmatprep.subr.mxu1 %v4472_v1  ;;  %3092 = vmatpush3.msra.mxu0 %v4495_v30 }
 0x252   :  { %3135 = vmatpush3.msk.msra.mxu1 %vm3506_vm6, %v4459_v31  ;;  %3093 = vmatprep.subr.mxu0 %v4472_v1 }
 0x253   :  { %3136 = vmatprep.subr.mxu1 %v4472_v1  ;;  %3094 = vmatpush3.msra.mxu0 %v4496_v32  ;;  %v3189_v32 = vld [vmem:[%s4347_s2] sm:$0xff] }
 0x254   :  { %3137 = vmatpush3.msk.msra.mxu1 %vm3539_vm15, %v4459_v31  ;;  %3095 = vmatprep.subr.mxu0 %v4472_v1 }
 0x255   :  { %3138 = vmatprep.subr.mxu1 %v4472_v1  ;;  %3096 = vmatpush3.msra.mxu0 %v4497_v33 }
 0x256   :  { %3139 = vmatpush3.msk.msra.mxu1 %vm4488_vm3, %v4459_v31  ;;  %3097 = vmatprep.subr.mxu0 %v4472_v1 }
 0x257   :  { %3140 = vmatprep.subr.mxu1 %v4472_v1  ;;  %3098 = vmatpush3.msra.mxu0 %v4498_v34 }
 0x258   :  { %3141 = vmatpush3.msk.msra.mxu1 %vm4484_vm13, %v4459_v31  ;;  %3099 = vmatprep.subr.mxu0 %v4472_v1 }
 0x259   :  { %3142 = vmatprep.subr.mxu1 %v4472_v1  ;;  %3100 = vmatpush3.msra.mxu0 %v4499_v36 }
 0x25a   :  { %3143 = vmatpush3.msk.msra.mxu1 %vm4485_vm10, %v4459_v31  ;;  %3101 = vmatprep.subr.mxu0 %v4472_v1  ;;  %vm4509_vm10 = vmmov %vm4508_vm5 }
 0x25b   :  { %3144 = vmatprep.subr.mxu1 %v4472_v1  ;;  %3102 = vmatpush3.msra.mxu0 %v4500_v38 }
 0x25c   :  { %3145 = vmatpush3.msk.msra.mxu1 %vm4486_vm14, %v4459_v31  ;;  %3146 = vmatprep.mubr.msk.f32.mxu1 %vm4468_vm8, %v4472_v1 }
 0x25d   :  { %3103 = vmatprep.subr.mxu0 %v4472_v1  ;;  %3147 = vmatmul.mubr.f32.vlgmr.msra.gmra.mxu1 %v4095_v47 }
 0x25e   :  { %3104 = vmatpush3.msra.mxu0 %v4501_v42  ;;  %3111 = vmatprep.mubr.msk.f32.mxu0 %vm4468_vm8, %v4472_v1 }
 0x25f   :  { %3105 = vmatprep.subr.mxu0 %v4472_v1  ;;  %3154 = vmatprep.subr.mxu1 %v4472_v1 }
 0x260   :  { %3106 = vmatpush3.msra.mxu0 %v4502_v44  ;;  %3155 = vmatpush3.msra.mxu1 %v4503_v50 }
 0x261   :  { %3107 = vmatprep.subr.mxu0 %v4472_v1  ;;  %3156 = vmatprep.mubr.msk.f32.mxu1 %vm4468_vm8, %v4472_v1 }
 0x262   :  { %3108 = vmatpush3.msra.mxu0 %v4504_v52  ;;  %3164 = vmatprep.subr.mxu1 %v4472_v1 }
 0x263   :  { %3109 = vmatprep.subr.mxu0 %v4472_v1 }
 0x264   :  { %3110 = vmatpush3.msra.mxu0 %v4505_v55 }
 0x265   :  { %3112 = vmatmul.mubr.f32.vlgmr.msra.gmra.mxu0 %v4095_v47  ;;  %3149 = vmatprep.subr.mxu0 %v4472_v1 }
 0x266   :  { %3150 = vmatpush3.msk.msra.mxu0 %vm4506_vm11, %v3954_v59  ;;  %3151 = vmatprep.mubr.msk.f32.mxu0 %vm4468_vm8, %v4472_v1 }
 0x267   :  { %3159 = vmatprep.subr.mxu0 %v4472_v1 }
 0x2db   :  { %v1466_v60 = vpop.f32.mrf.mxu1 }
 0x2dd   :  { %v3008_v61 = vpop.f32.mrf.mxu1 }
 0x2e3   :  { %v1315_v62 = vpop.f32.mrf.mxu0 }
 0x2e4   :  { %v1467_v40 = vadd.f32 %v1466_v60, %v1315_v62 }
 0x2e5   :  { %v2973_v9 = vpop.f32.mrf.mxu0 }
 0x2fb   :  { %v1659_v11 = vpop.f32.mrf.mxu1 }
 0x2fd   :  { %v3078_v16 = vpop.f32.mrf.mxu1 }
 0x304   :  { %v1570_v21 = vpop.f32.mrf.mxu0 }
 0x305   :  { %v1571_v48 = vadd.f32 %v1570_v21, %v1467_v40 }
 0x306   :  { %v3043_v31 = vpop.f32.mrf.mxu0 }
 0x307   :  { %v1660_v63 = vadd.f32 %v1659_v11, %v1571_v48 }
 0x31d   :  { %v1865_v39 = vpop.f32.mrf.mxu1 }
 0x31f   :  { %v3148_v43 = vpop.f32.mrf.mxu1 }
 0x325   :  { %v1778_v7 = vpop.f32.mrf.mxu0 }
 0x326   :  { %v1779_v12 = vadd.f32 %v1778_v7, %v1660_v63 }
 0x327   :  { %v3113_v13 = vpop.f32.mrf.mxu0 }
 0x328   :  { %v1866_v35 = vadd.f32 %v1865_v39, %v1779_v12 }
 0x32a   :  { %v1869_v46 = vmul.f32 0.032258064, %v1866_v35 }
 0x32c   :  { %3185 = vrsqrt.f32 %v1869_v46  ;;  %vm1872_vm1 = vcmp.eq.f32.partialorder %v1869_v46, inf  ;;  %v1875_v58 = vand.u32 2147483648, %v1869_v46  ;;  %vm1874_vm2 = vcmp.eq.f32.partialorder %v1869_v46, 0.0 }
 0x339   :  { %v3186_v23 = vpop.eup %3185 }
 0x33a   :  { %v1871_v56 = vmul.f32 %v3186_v23, %v1869_v46 }
 0x33c   :  { %v1873_v28 = vsel %vm1872_vm1, %v1869_v46, %v1871_v56 }
 0x33d   :  { %v1876_v15 = vsel %vm1874_vm2, %v1875_v58, %v1873_v28 }
 0x33e   :  { %v1877_v14 = vadd.f32 1e-06, %v1876_v15 }
 0x340   :  { %3187 = vrcp.f32 %v1877_v14 }
 0x34d   :  { %v3188_v8 = vpop.eup %3187 }
 0x34e   :  { %v1880_v54 = vmul.f32 %v3188_v8, %v1878_v20 }
 0x350   :  { %v1882_v27 = vsel %vm4507_vm4, %v1880_v54, 0 }
 0x351   :  { %v1950_v6 = vand.u32 4294901760, %v1882_v27 }
 0x353   :  { %v1951_v0 = vsub.f32 %v1882_v27, %v1950_v6  ;;  %3157 = vmatmul.mubr.f32.vlgmr.msra.gmra.mxu1 %v1950_v6 }
 0x354   :  { %3165 = vmatpush3.msk.msra.mxu1 %vm4508_vm5, %v3954_v59  ;;  %3166 = vmatprep.mubr.msk.f32.mxu1 %vm4468_vm8, %v4472_v1 }
 0x355   :  { %v1952_v3 = vand.u32 4294901760, %v1951_v0  ;;  %3174 = vmatprep.subr.mxu1 %v4472_v1 }
 0x357   :  { %3167 = vmatmul.mubr.f32.vlgmr.msra.gmra.mxu1 %v1952_v3  ;;  %v1953_v5 = vsub.f32 %v1951_v0, %v1952_v3 }
 0x358   :  { %3175 = vmatpush3.msk.msra.mxu1 %vm4509_vm10, %v3954_v59  ;;  %3176 = vmatprep.mubr.msk.f32.mxu1 %vm4468_vm8, %v4472_v1 }
 0x359   :  { %v1954_v26 = vand.u32 4294901760, %v1953_v5 }
 0x35b   :  { %3152 = vmatmul.mubr.f32.vlgmr.msra.gmra.mxu0 %v1954_v26  ;;  %3177 = vmatmul.mubr.f32.vlgmr.msra.gmra.mxu1 %v1950_v6 }
 0x35c   :  { %3160 = vmatpush3.msra.mxu0 %v3960_v53  ;;  %3161 = vmatprep.mubr.msk.f32.mxu0 %vm4468_vm8, %v4472_v1 }
 0x35d   :  { %3169 = vmatprep.subr.mxu0 %v4472_v1 }
 0x35f   :  { %3162 = vmatmul.mubr.f32.vlgmr.msra.gmra.mxu0 %v1951_v0 }
 0x360   :  { %3170 = vmatpush3.msra.mxu0 %v3964_v4  ;;  %3171 = vmatprep.mubr.msk.f32.mxu0 %vm4468_vm8, %v4472_v1  ;;  %v2331_v1 = vstv %s4346_s1 }
 0x363   :  { %3172 = vmatmul.mubr.f32.vlgmr.msra.gmra.mxu0 %v1950_v6 }
 0x413   :  { %v2032_v59 = vpop.f32.mrf.mxu1 }
 0x415   :  { %v3158_v18 = vpop.f32.mrf.mxu1 }
 0x417   :  { %v2180_v57 = vpop.f32.mrf.mxu1 }
 0x419   :  { %v3168_v2 = vpop.f32.mrf.mxu1 }
 0x41b   :  { %v1956_v45 = vpop.f32.mrf.mxu0  ;;  %v2326_v37 = vpop.f32.mrf.mxu1 }
 0x41c   :  { %v2033_v49 = vadd.f32 %v2032_v59, %v1956_v45 }
 0x41d   :  { %v3153_v47 = vpop.f32.mrf.mxu0  ;;  %v3178_v53 = vpop.f32.mrf.mxu1 }
 0x41f   :  { %v2106_v51 = vpop.f32.mrf.mxu0 }
 0x420   :  { %v2107_v10 = vadd.f32 %v2106_v51, %v2033_v49 }
 0x421   :  { %v3163_v22 = vpop.f32.mrf.mxu0 }
 0x422   :  { %v2181_v17 = vadd.f32 %v2180_v57, %v2107_v10 }
 0x423   :  { %v2254_v19 = vpop.f32.mrf.mxu0 }
 0x424   :  { %v2255_v24 = vadd.f32 %v2254_v19, %v2181_v17 }
 0x425   :  { %v3173_v4 = vpop.f32.mrf.mxu0 }
 0x426   :  { %v2327_v25 = vadd.f32 %v2326_v37, %v2255_v24 }
 0x428   :  { %v2330_v29 = vmul.f32 %v2327_v25, %v4091_v41  ;;  %v2333_v33 = vmul.f32 %v3189_v32, %v2327_v25 }
 0x42a   :  { %v2332_v30 = vsub.f32 %v2331_v1, %v2330_v29 }
 0x42c   :  { %v2334_v34 = vadd.f32 %v2333_v33, %v2332_v30 }
 0x42e   :  { %2335 = vst [vmem:[#allocation4] sm:$0xff] %v2334_v34 }
 0x42f   :  { %2340 = vsyncadd [#allocation5], 64  ;;  %s3215_s19 = smov [#allocation4]  }
 0x430   :  { %s2341_s20 = sshll.u32 %s3215_s19, 4  ;;  %s2342_s20 = int_to_ptr.vmem [resolvable:$true] %s2341_s20 }
 0x431   :  { %s3190_s21 = scalar_lea.vmem %s2342_s20, 64  ;;  %s3194_s22 = scalar_lea.vmem %s2342_s20, 128 }
 0x432   :  { %p3191_p0 = scmp.ne.s32.totalorder %s2342_s20, %s3190_s21  ;;  %p3195_p1 = scmp.lt.s32.totalorder %s2342_s20, %s2342_s20 }
 0x433   :  { %p3196_p2 = scmp.lt.s32.totalorder %s3194_s22, %s3190_s21 }
 0x435   :  { %p3197_p3 = por %p3196_p2, %p3195_p1 }
 0x437   :  { %p3198_p4 = pnand %p3197_p3, %p3191_p0 }
 0x439   :  { %3201 = shalt.err (!%p3198_p4)
}
 0x43a   :  { %s3216_s1 = smov 64   ;;  %s3217_s23 = smov 4  }
 0x43b   :  { %2347 = dma.vmem_to_hbm [thread:$0]  %s2342_s20, 64, %s4348_s3, [#allocation5], %s3216_s1, %s3216_s1, %s3217_s23  }
 0x43c   :  { %3210 = dma.done.wait [#allocation5], 128  }
 0x43d   :  { %3211 = vsyncadd [#allocation5], 4294967168 }
 0x43e   :  { %2351 = vsyncpa [#allocation5], 1 }

</bundles_post_ra>
